<compile_context>
chip_gen: v5e
topology: v5e:2x2
jax: 0.10.0
libtpu: 0.0.40
codegen_flags: <defaults>
</compile_context>

<pallas_src>
import functools

import jax
import jax.numpy as jnp
from jax import lax
from jax.experimental import pallas as pl
from jax.experimental.pallas import tpu as pltpu


def _cdiv(a, b):
    return -(-a // b)


def _round_up(x, m):
    return _cdiv(x, m) * m


def _gram_kernel(f_ref, gm_ref, *, scale, hw, tk, compute_dtype, mask_tail):
    """Accumulate one K-chunk of GM = (F @ F.T) * scale into the resident gm_ref."""
    k = pl.program_id(0)

    @pl.when(k == 0)
    def _init():
        gm_ref[...] = jnp.zeros_like(gm_ref)

    # Load the (bn_pad, tk) feature chunk; optional in-kernel bf16 cast (no-op
    # if compute_dtype == streamed dtype).
    f = f_ref[...].astype(compute_dtype)

    if mask_tail:
        # The last K-chunk over-hangs hw: padding values are unspecified, so
        # zero the out-of-bounds lanes before the matmul.  All-true for the
        # non-last chunks; cheap VPU filler either way.
        col = lax.broadcasted_iota(jnp.int32, f.shape, dimension=1)
        f = jnp.where(col < (hw - k * tk), f, jnp.zeros_like(f))

    # f @ f.T contracting the LAST dim of BOTH operands: no explicit transpose
    # (no XLU pass), straight to the MXU with f32 accumulation into the
    # resident output block.
    gm_ref[...] += lax.dot_general(
        f,
        f,
        dimension_numbers=(((1,), (1,)), ((), ())),
        preferred_element_type=jnp.float32,
    )

    @pl.when(k == pl.num_programs(0) - 1)
    def _finalize():
        gm_ref[...] *= jnp.float32(scale)  # scale = weight / (b*n*h*w)


def style_loss_forward(x, target, weight, *, compute_dtype=None):
    """Forward of the PyTorch StyleLoss module.

    x:       (b, n, h, w) NCHW feature maps.
    target:  (b*n, b*n) style Gram matrix, already detached and pre-multiplied
             by `weight` (exactly what StyleLoss.__init__ stores).
    weight:  python float.
    compute_dtype: dtype fed to the MXU.  None -> same as x (bit-exact f32
             path).  Pass jnp.bfloat16 for ~2-4x MXU throughput (in-kernel
             cast, f32 accumulation).

    Returns (output, GM, loss) mirroring the attributes the PyTorch module
    sets: output = input.clone(), GM = gram(input)*weight, loss = MSE(GM, target).
    """
    b, n, h, w = x.shape
    bn, hw = b * n, h * w

    features = x.reshape(bn, hw)        # contiguous reshape; no copy, no pad pass
    in_dtype = features.dtype
    if compute_dtype is None:
        compute_dtype = in_dtype
    feat_bytes = jnp.dtype(in_dtype).itemsize

    # Sublane granularity of the *streamed* dtype (f32: 8 rows/vreg, bf16: 16,
    # 8-bit: 32).  Rows beyond bn are never materialized — the block simply
    # over-hangs the array; garbage rows only land in GM rows/cols sliced away.
    sublane = {4: 8, 2: 16, 1: 32}.get(feat_bytes, 8)
    bn_pad = _round_up(bn, sublane)

    # --- VMEM budget per TPU generation (128 MiB v5e/v6e, 64 MiB v7x). ---
    try:
        vmem_cap = int(pltpu.get_tpu_info().vmem_capacity_bytes)
    except Exception:
        vmem_cap = 64 * 1024 * 1024     # conservative fallback
    budget = int(vmem_cap * 0.6)

    # K-tile selection: double-buffered feature chunks + the resident GM block
    # must fit the budget; also force >= 4 K-chunks (when hw allows) so the
    # BlockSpec pipeline can hide the feature DMA behind the MXU.
    fixed = 2 * bn_pad * bn_pad * 4 + (2 << 20)
    avail = max(budget - fixed, 2 << 20)
    tk_cap = max(128, (avail // (2 * bn_pad * feat_bytes)) // 128 * 128)
    hw_tiles = _cdiv(hw, 128)
    n_k = max(_cdiv(hw, tk_cap), min(4, hw_tiles))
    tk = _round_up(_cdiv(hw, n_k), 128)
    n_k = _cdiv(hw, tk)
    mask_tail = (hw % tk) != 0

    vmem_needed = 2 * bn_pad * tk * feat_bytes + 2 * bn_pad * bn_pad * 4
    vmem_limit = int(min(vmem_cap * 0.9, max(vmem_needed + (4 << 20), 32 << 20)))

    kernel = functools.partial(
        _gram_kernel,
        scale=float(weight) / float(bn * hw),
        hw=hw,
        tk=tk,
        compute_dtype=compute_dtype,
        mask_tail=mask_tail,
    )

    cost = pl.CostEstimate(
        flops=2 * bn_pad * bn_pad * n_k * tk,
        transcendentals=0,
        bytes_accessed=bn * hw * feat_bytes + bn_pad * bn_pad * 4,
    )

    gm_pad = pl.pallas_call(
        kernel,
        out_shape=jax.ShapeDtypeStruct((bn_pad, bn_pad), jnp.float32),
        grid_spec=pltpu.PrefetchScalarGridSpec(
            num_scalar_prefetch=0,
            grid=(n_k,),
            in_specs=[pl.BlockSpec((bn_pad, tk), lambda k: (0, k))],   # K-chunks
            out_specs=pl.BlockSpec((bn_pad, bn_pad), lambda k: (0, 0)),  # resident GM
        ),
        compiler_params=pltpu.CompilerParams(
            dimension_semantics=("arbitrary",),   # K is a reduction axis
            vmem_limit_bytes=vmem_limit,
        ),
        cost_estimate=cost,
    )(features)

    gm = gm_pad[:bn, :bn]
    # bn^2 MSE is microseconds in plain XLA; keeping it out of the kernel frees
    # the target/loss VMEM residents (largest win under v7x's 64 MiB VMEM).
    loss = jnp.mean((gm - target.astype(jnp.float32)) ** 2)
    output = x  # functional equivalent of input.clone()
    return output, gm, loss


def _gram_ref(x):
    b, n, h, w = x.shape
    f = x.reshape(b * n, h * w)
    return (f @ f.T) / (b * n * h * w)


if __name__ == "__main__":
    key = jax.random.PRNGKey(0)
    k_in, k_tgt = jax.random.split(key)

    b, n, h, w = 2, 4, 16, 16
    weight = 1000.0

    x = jax.random.normal(k_in, (b, n, h, w), dtype=jnp.float32)
    # "target" in the PyTorch module is a detached gram matrix of some style
    # feature map, pre-multiplied by weight in __init__.
    style_feats = jax.random.normal(k_tgt, (b, n, h, w), dtype=jnp.float32)
    target = _gram_ref(style_feats) * weight

    # ---- exact f32 path ---------------------------------------------------
    out, gm, loss = style_loss_forward(x, target, weight)
    jax.block_until_ready((out, gm, loss))

    gm_ref = _gram_ref(x) * weight
    loss_ref = jnp.mean((gm_ref - target) ** 2)
    assert jnp.allclose(out, x), "output must equal input (clone)"
    assert jnp.allclose(gm, gm_ref, rtol=1e-5, atol=1e-5), "gram mismatch"
    assert jnp.allclose(loss, loss_ref, rtol=1e-4, atol=1e-4), "loss mismatch"

    # ---- bf16 MXU path (in-kernel cast, f32 accumulation) ------------------
    _, gm_b, loss_b = style_loss_forward(x, target, weight,
                                         compute_dtype=jnp.bfloat16)
    jax.block_until_ready((gm_b, loss_b))
    assert jnp.allclose(gm_b, gm_ref, rtol=5e-2, atol=2.0), "bf16 gram mismatch"
    assert jnp.allclose(loss_b, loss_ref, rtol=1e-1), "bf16 loss mismatch"

    print("KERNEL_OK")
</pallas_src>

<mosaic_0001>
module attributes {stable_mosaic.version = 11 : i64} {
  func.func @_gram_kernel(%arg0: i32, %arg1: memref<8x128xf32, #tpu.memory_space<vmem>>, %arg2: memref<8x8xf32, #tpu.memory_space<vmem>>) attributes {dimension_semantics = [#tpu.dimension_semantics<arbitrary>], iteration_bounds = array<i64: 2>, scalar_prefetch = 0 : i64, scratch_operands = 0 : i64, tpu.core_type = #tpu.core_type<tc>, window_params = [{transform_indices = @transform_0, window_bounds = array<i64: 8, 128>}, {pipeline_mode = #tpu.pipeline_mode<synchronous>, transform_indices = @transform_1, window_bounds = array<i64: 8, 8>}]} {
    %c0_i32 = arith.constant 0 : i32
    %0 = arith.cmpi eq, %arg0, %c0_i32 : i32
    %1 = arith.extui %0 : i1 to i32
    %c0_i32_0 = arith.constant 0 : i32
    %2 = arith.cmpi ne, %1, %c0_i32_0 : i32
    scf.if %2 {
      %cst_7 = arith.constant 0.000000e+00 : f32
      %11 = vector.broadcast %cst_7 : f32 to vector<8x8xf32>
      %c0_8 = arith.constant 0 : index
      %c0_9 = arith.constant 0 : index
      %12 = vector.load %arg2[%c0_8, %c0_9] : memref<8x8xf32, #tpu.memory_space<vmem>>, vector<8x8xf32>
      tpu.vector_store %arg2[%c0_8, %c0_9], %11 {strides = array<i32>} : memref<8x8xf32, #tpu.memory_space<vmem>>, vector<8x8xf32>,
    } else {
    }
    %c0 = arith.constant 0 : index
    %c0_1 = arith.constant 0 : index
    %3 = vector.load %arg1[%c0, %c0_1] : memref<8x128xf32, #tpu.memory_space<vmem>>, vector<8x128xf32>
    %c0_2 = arith.constant 0 : index
    %c0_3 = arith.constant 0 : index
    %4 = vector.load %arg2[%c0_2, %c0_3] : memref<8x8xf32, #tpu.memory_space<vmem>>, vector<8x8xf32>
    %cst = arith.constant dense<0.000000e+00> : vector<8x8xf32>
    %5 = tpu.matmul %3, %3, %cst {dimension_numbers = #tpu.dot_dimension_numbers<[1], [1], [0], [0], [0, 0, 1, 0], [], []>} : vector<8x128xf32>, vector<8x128xf32>, vector<8x8xf32> -> vector<8x8xf32>
    %6 = arith.addf %4, %5 : vector<8x8xf32>
    %c0_4 = arith.constant 0 : index
    %c0_5 = arith.constant 0 : index
    %7 = vector.load %arg2[%c0_4, %c0_5] : memref<8x8xf32, #tpu.memory_space<vmem>>, vector<8x8xf32>
    tpu.vector_store %arg2[%c0_4, %c0_5], %6 {strides = array<i32>} : memref<8x8xf32, #tpu.memory_space<vmem>>, vector<8x8xf32>,
    %c1_i32 = arith.constant 1 : i32
    %8 = arith.cmpi eq, %arg0, %c1_i32 : i32
    %9 = arith.extui %8 : i1 to i32
    %c0_i32_6 = arith.constant 0 : i32
    %10 = arith.cmpi ne, %9, %c0_i32_6 : i32
    scf.if %10 {
      %c0_7 = arith.constant 0 : index
      %c0_8 = arith.constant 0 : index
      %11 = vector.load %arg2[%c0_7, %c0_8] : memref<8x8xf32, #tpu.memory_space<vmem>>, vector<8x8xf32>
      %cst_9 = arith.constant 0.48828125 : f32
      %12 = vector.broadcast %cst_9 : f32 to vector<8x8xf32>
      %13 = arith.mulf %11, %12 : vector<8x8xf32>
      %c0_10 = arith.constant 0 : index
      %c0_11 = arith.constant 0 : index
      %14 = vector.load %arg2[%c0_10, %c0_11] : memref<8x8xf32, #tpu.memory_space<vmem>>, vector<8x8xf32>
      tpu.vector_store %arg2[%c0_10, %c0_11], %13 {strides = array<i32>} : memref<8x8xf32, #tpu.memory_space<vmem>>, vector<8x8xf32>,
    } else {
    }
    return
  }
  func.func @transform_0(%arg0: i32) -> (i32, i32) {
    %c0_i32 = arith.constant 0 : i32
    %c0_i32_0 = arith.constant 0 : i32
    return %c0_i32, %arg0 : i32, i32
  }
  func.func @transform_1(%arg0: i32) -> (i32, i32) {
    %c0_i32 = arith.constant 0 : i32
    %c0_i32_0 = arith.constant 0 : i32
    %c0_i32_1 = arith.constant 0 : i32
    return %c0_i32, %c0_i32_0 : i32, i32
  }
}

</mosaic_0001>

<bundles_post_ra>
// kernel: tpu_custom_call.1
= control target key start
LH: loop header
LB: loop body
LE: loop exit
PB: predicated region body
PF: predicated region fallthrough
CT: control target
= control target key end

     0   :  { %6 = vsyncpa [#allocation3], 0  ;;  %s484_s0 = inlined_call_operand.hbm [shape: f32[8,256], index: 0, kind: input, shape index: {}]   ;;  %s485_s1 = inlined_call_operand.hbm [shape: f32[8,8], index: 1, kind: output, shape index: {}]  }
   0x1   :  { %8 = vsyncpa [#allocation3 + $0x1], 0 }
   0x2   :  { %9 = vsyncpa [#allocation4], 0  ;;  %s389_s6 = smov 0   ;;  %s391_s7 = smov 0  }
   0x3   :  { %s393_s8 = smov 0   ;;  %s395_s9 = smov 0  }
   0x4 LB: > { %s408_s10 = sadd.s32 4294967295, %s375_s9   ;;  %s411_s11 = sadd.s32 1, %s375_s9   ;;  %s375_s9 = sphi %s395_s9, %s492_s9   ;;  %s371_s8 = sphi %s393_s8, %s491_s8   ;;  %s367_s7 = sphi %s391_s7, %s490_s7   ;;  %s363_s6 = sphi %s389_s6, %s489_s6  }
   0x5   : > { %s19_s12 = ssub.s32 %s375_s9, %s411_s11  ;;  %s22_s13 = sadd.s32 1, %s371_s8 }
   0x6   : > { %p20_p0 = scmp.eq.s32.totalorder %s19_s12, 0  ;;  %p29_p1 = scmp.ne.s32.totalorder %s371_s8, %s367_s7 }
   0x7   : > { %p30_p2 = scmp.eq.s32.totalorder %s375_s9, 0  ;;  %p35_p3 = scmp.ne.s32.totalorder %s367_s7, %s363_s6 }
   0x8   : > { %s421_s14 = scalar_select %p20_p0, %s371_s8, %s22_s13  }
   0x9   : > { %p423_p4 = por %p30_p2, %p29_p1  ;;  %p36_p5 = scmp.eq.s32.totalorder %s408_s10, 0 }
   0xa   : > { %p242_p6 = scmp.lt.s32.totalorder %s375_s9, 2  ;;  %s80_s17 = sand.u32 1, %s371_s8  }
   0xb   : > { %p429_p7 = por %p36_p5, %p35_p3  ;;  %s222_s18 = sshll.u32 %s80_s17, 3 }
   0xc   : > { %s223_s19 = sshll.u32 %s375_s9, 3  ;;  %s84_s23 = scalar_lea.vmem [#allocation2], %s222_s18 }
   0xd   : > { %s88_s22 = scalar_lea.hbm %s484_s0, %s223_s19  ;;  %s92_s24 = sshll.u32 %s84_s23, 4  ;;  %s93_s24 = int_to_ptr.vmem [resolvable:$true] %s92_s24 }
   0xe   : > { %s90_s25 = sshll.u32 %s88_s22, 4  ;;  %p440_p8 = pnand %p242_p6, %p423_p4  ;;  %s91_s25 = int_to_ptr.hbm [resolvable:$true] %s90_s25 }
   0xf   : > { %p224_p9 = scmp.ge.s32.totalorder %s375_s9, 1  ;;  %p97_p10 = scmp.lt.s32.totalorder %s375_s9, 3 }
  0x10   : > { %s81_s27 = scalar_lea.sflag [#allocation3], %s80_s17  ;;  %s279_s28 = sshra.s32 %s91_s25, 4  ;;  %s280_s28 = int_to_ptr.hbm [resolvable:$true] %s279_s28 }
  0x11   : > { %s281_s29 = scalar_lea.hbm %s280_s28, 8  ;;  %p283_p12 = pneg %p440_p8 }
  0x12   : > { %p282_p11 = scmp.ne.s32.totalorder %s280_s28, %s281_s29  ;;  %s286_s3 = scalar_lea.hbm %s484_s0, 16 }
  0x13   : > { %p287_p1 = scmp.lt.s32.totalorder %s280_s28, %s484_s0  ;;  %p288_p2 = scmp.lt.s32.totalorder %s286_s3, %s281_s29 }
  0x14   : > { %p284_p13 = pnand %p283_p12, %p282_p11 }
  0x15   : > { %p289_p3 = por %p288_p2, %p287_p1 }
  0x16   : > { %p285_p0 = pneg %p284_p13 }
  0x18   : > { %p290_p4 = pnand %p289_p3, %p285_p0 }
  0x1a   : > { %293 = shalt.err (!%p290_p4)
}
  0x1b   : > { %241 = dma.hbm_to_vmem [thread:$0]  (!%p440_p8), %s91_s25, 128, %s93_s24, %s81_s27  }
  0x1c   : > { %p98_p5 = pnand %p224_p9, %p97_p10 }
  0x1d   : > { %s103_s6 = sand.u32 (!%p98_p5), 1, %s367_s7  }
  0x1e   : > { %101 = sbr.rel (%p98_p5) target bundleno = 193 (0xc1), region = 24  ;;  %s225_s12 = sshll.u32 (!%p98_p5), %s103_s6, 3 }
  0x1f   : > { %s104_s13 = scalar_lea.sflag (!%p98_p5), [#allocation3], %s103_s6  ;;  %s107_s15 = scalar_lea.vmem (!%p98_p5), [#allocation2], %s225_s12 }
  0x23   : > { %354 = dma.done.wait (%p429_p7), %s104_s13, 128  }
  0x24   : > { %356 = vsyncadd (%p429_p7), %s104_s13, 4294967168  ;;  %p226_p6 = scmp.ne.s32.totalorder %s408_s10, 0 }
  0x26   : > { %125 = sbr.rel (%p226_p6) target bundleno = 45 (0x2d), region = 32 }
  0x2b   : > { %vm126_vm0 = vcmask 64512   ;;  %v377_v0 = vmov 0.0  }
  0x2c   : > { %127 = vst.msk [vmem:[#allocation5] sm:$0xff] %vm126_vm0, %v377_v0 }
  0x2d PF: > { %v128_v1 = vld [vmem:[%s107_s15] sm:$0xff]  ;;  %vm151_vm1 = vcmask 64512   ;;  %p227_p8 = scmp.ne.s32.totalorder %s408_s10, 1 }
  0x2e   : > { %145 = vmatpush.xpose.msra.mxu0 %v128_v1 }
  0x31   : > { %146 = vmatmul.f32.vlgmr.msra.gmra.mxu0 %v128_v1 }
  0x33   : > { %v129_v2 = vld [vmem:[#allocation5] sm:$0xff] }
  0xad   : > { %156 = sbr.rel (%p227_p8) target bundleno = 188 (0xbc), region = 36 }
  0xae   : > { %v147_v3 = vpop.f32.mrf.mxu0 }
  0xaf   : > { %v150_v4 = vadd.f32 %v147_v3, %v129_v2 }
  0xb1   : > { %152 = vst.msk [vmem:[#allocation5] sm:$0xff] %vm151_vm1, %v150_v4 }
  0xb8   : > { %v157_v5 = vld [vmem:[#allocation5] sm:$0xff] }
  0xb9   : > { %v158_v6 = vmul.f32 0.48828125, %v157_v5 }
  0xbb   : > { %159 = vst.msk [vmem:[#allocation5] sm:$0xff] %vm151_vm1, %v158_v6 }
  0xbc PF: > { %p243_p7 = scmp.eq.s32.totalorder %s408_s10, 1  ;;  %s378_s9 = smov [#allocation5]  }
  0xbd   : > { %s166_s16 = sshll.u32 %s378_s9, 4  ;;  %s168_s19 = sshll.u32 %s485_s1, 4  ;;  %s167_s16 = int_to_ptr.vmem [resolvable:$true] %s166_s16  ;;  %s169_s19 = int_to_ptr.hbm [resolvable:$true] %s168_s19 }
  0xbe   : > { %235 = dma.vmem_to_hbm [thread:$0]  (%p243_p7), %s167_s16, 128, %s169_s19, [#allocation4]  }
  0xbf   : > { %358 = dma.done.wait (%p243_p7), [#allocation4], 128  }
  0xc0   : > { %360 = vsyncadd (%p243_p7), [#allocation4], 4294967168 }
  0xc1 PF: > { %p12_p9 = scmp.ge.s32.totalorder %s411_s11, 4   ;;  %s489_s6 = smov %s367_s7 }
  0xc2   : > { %s490_s7 = smov %s371_s8  ;;  %s491_s8 = smov %s421_s14 }
  0xc3   : > { %s492_s9 = smov %s411_s11  ;;  %14 = sbr.rel (!%p12_p9) target bundleno = 4 (0x4), region = 69 }
  0xc8   :  { %182 = vsyncpa [#allocation3], 1 }
  0xc9   :  { %184 = vsyncpa [#allocation3 + $0x1], 1 }
  0xca   :  { %185 = vsyncpa [#allocation4], 1 }
  0xcb   :  { %187 = vsyncpa [#allocation4 + $0x1], 1 }

</bundles_post_ra>
